<compile_context>
chip_gen: v7x
topology: tpu7x:2x2x1
jax: 0.10.0
libtpu: 0.0.40
codegen_flags: <defaults>
</compile_context>

<pallas_src>
import jax
import jax.numpy as jnp
from jax.experimental import pallas as pl
from jax.experimental.pallas import tpu as pltpu


def _vdenoise_kernel(w_ref, sa_ref, sm_ref, x_ref, o_ref):
    # w_ref:  VMEM (BC, BC)   resident block-diag weight kron(I_B, W)
    # sa_ref: VMEM (BC, 1)    per-row sqrt_alphas_cumprod[t_b]            (resident)
    # sm_ref: VMEM (BC, 1)    per-row sqrt_one_minus_alphas_cumprod[t_b]  (resident)
    # x_ref:  VMEM (BC, tile) current lane tile of the input slab
    # o_ref:  VMEM (BC, tile)
    x = x_ref[...]
    # synthetic apply_model: per-batch 1x1 conv over channels (block-diag matmul)
    v = jnp.dot(w_ref[...], x, preferred_element_type=jnp.float32)
    # predict_eps_from_z_and_v: per-batch scalars broadcast over (BC, tile), f32
    e_t = sa_ref[...] * v + sm_ref[...] * x.astype(jnp.float32)
    o_ref[...] = e_t.astype(o_ref.dtype)


def _pick_hw_tile(hw, max_tile=8192):
    """Largest lane tile <= max_tile that is a multiple of 128 and divides hw;
    falls back to the full extent (always legal for BlockSpec)."""
    if hw <= max_tile or hw % 128 != 0:
        return hw
    for t in range(max_tile, 127, -128):
        if hw % t == 0:
            return t
    return hw


def vdenoiser_forward(x_nchw, timesteps, sqrt_ac, sqrt_1mac, w):
    """x_nchw: [B, C, H, W]; timesteps: [B] (float or int);
    sqrt_ac / sqrt_1mac: [T] f32 schedules; w: [C, C] synthetic inner-model weight."""
    B, C, H, W = x_nchw.shape
    HW = H * W
    BC = B * C
    T = sqrt_ac.shape[0]

    # t.to(torch.int) semantics (truncation); clamp so no OOB gather can occur.
    ts = jnp.clip(timesteps.astype(jnp.int32), 0, T - 1)
    sa = sqrt_ac[ts].astype(jnp.float32)       # (B,)
    sm = sqrt_1mac[ts].astype(jnp.float32)     # (B,)
    # Broadcast columns: row b*C + c carries batch b's scalars.
    sa_col = jnp.repeat(sa, C).reshape(BC, 1)
    sm_col = jnp.repeat(sm, C).reshape(BC, 1)

    # Block-diagonal weight so one matmul covers every batch element.
    wblock = jnp.kron(jnp.eye(B, dtype=jnp.float32), w.astype(jnp.float32))  # (BC, BC)

    x2d = x_nchw.reshape(BC, HW)               # contiguous view, lane-dense slab
    tile = _pick_hw_tile(HW)
    grid = (HW // tile,)

    bytes_elem = jnp.dtype(x2d.dtype).itemsize
    cost = pl.CostEstimate(
        flops=2 * BC * BC * HW + 3 * BC * HW,
        transcendentals=0,
        bytes_accessed=2 * BC * HW * bytes_elem + BC * BC * 4 + 2 * BC * 4,
    )

    out2d = pl.pallas_call(
        _vdenoise_kernel,
        out_shape=jax.ShapeDtypeStruct((BC, HW), x2d.dtype),
        grid_spec=pltpu.PrefetchScalarGridSpec(
            num_scalar_prefetch=0,
            grid=grid,
            in_specs=[
                pl.BlockSpec((BC, BC), lambda i: (0, 0)),    # weight (resident)
                pl.BlockSpec((BC, 1), lambda i: (0, 0)),     # sa column (resident)
                pl.BlockSpec((BC, 1), lambda i: (0, 0)),     # sm column (resident)
                pl.BlockSpec((BC, tile), lambda i: (0, i)),  # x lane tile
            ],
            out_specs=pl.BlockSpec((BC, tile), lambda i: (0, i)),
        ),
        compiler_params=pltpu.CompilerParams(
            # Lane-tile axis is independent -> shardable across TCs (v7x megacore).
            dimension_semantics=("parallel",)),
        cost_estimate=cost,
        # VMEM footprint is tiny (<= ~1 MiB even at realistic SD latent sizes:
        # 2 * 2 * BC*tile*4 bytes), well under the v7x 32 MiB scoped default,
        # so no explicit vmem_limit_bytes is needed.
    )(wblock, sa_col, sm_col, x2d)

    return out2d.reshape(B, C, H, W)


def _reference(x_nchw, timesteps, sqrt_ac, sqrt_1mac, w):
    B, C, H, W = x_nchw.shape
    T = sqrt_ac.shape[0]
    ts = jnp.clip(timesteps.astype(jnp.int32), 0, T - 1)
    x = x_nchw.reshape(B, C, H * W).astype(jnp.float32)
    v = jnp.einsum("oc,bcs->bos", w.astype(jnp.float32), x)
    sa = sqrt_ac[ts].astype(jnp.float32)[:, None, None]
    sm = sqrt_1mac[ts].astype(jnp.float32)[:, None, None]
    return (sa * v + sm * x).astype(x_nchw.dtype).reshape(B, C, H, W)


if __name__ == "__main__":
    key = jax.random.PRNGKey(0)
    T = 1000

    # Deterministic DDPM-style schedule (linear betas), like the inner SD model.
    betas = jnp.linspace(1e-4, 2e-2, T, dtype=jnp.float32)
    alphas_cumprod = jnp.cumprod(1.0 - betas)
    sqrt_ac = jnp.sqrt(alphas_cumprod).astype(jnp.float32)
    sqrt_1mac = jnp.sqrt(1.0 - alphas_cumprod).astype(jnp.float32)

    k1, k2, k3 = jax.random.split(key, 3)

    # --- small canonical shape ---------------------------------------------
    B, C, H, W = 2, 4, 16, 16
    x = jax.random.normal(k1, (B, C, H, W), dtype=jnp.float32)
    timesteps = jnp.array([37.0, 951.0], dtype=jnp.float32)   # float ts, truncated inside
    w = (jax.random.normal(k2, (C, C), dtype=jnp.float32) * 0.1
         + jnp.eye(C, dtype=jnp.float32))

    out = jax.block_until_ready(vdenoiser_forward(x, timesteps, sqrt_ac, sqrt_1mac, w))
    ref = _reference(x, timesteps, sqrt_ac, sqrt_1mac, w)
    assert out.shape == (B, C, H, W)
    assert jnp.allclose(out, ref, atol=1e-5, rtol=1e-5)

    # --- larger spatial size to exercise the multi-tile lane pipeline -------
    H2 = W2 = 96                      # HW = 9216 -> 2 lane tiles of 4608
    x2 = jax.random.normal(k3, (B, C, H2, W2), dtype=jnp.float32)
    out2 = jax.block_until_ready(vdenoiser_forward(x2, timesteps, sqrt_ac, sqrt_1mac, w))
    ref2 = _reference(x2, timesteps, sqrt_ac, sqrt_1mac, w)
    assert out2.shape == (B, C, H2, W2)
    assert jnp.allclose(out2, ref2, atol=1e-5, rtol=1e-5)

    print("KERNEL_OK")
</pallas_src>

<mosaic_0001>
module attributes {stable_mosaic.version = 11 : i64} {
  func.func @_vdenoise_kernel(%arg0: i32, %arg1: memref<8x8xf32, #tpu.memory_space<vmem>>, %arg2: memref<8x1xf32, #tpu.memory_space<vmem>>, %arg3: memref<8x1xf32, #tpu.memory_space<vmem>>, %arg4: memref<8x256xf32, #tpu.memory_space<vmem>>, %arg5: memref<8x256xf32, #tpu.memory_space<vmem>>) attributes {dimension_semantics = [#tpu.dimension_semantics<parallel>], iteration_bounds = array<i64: 1>, scalar_prefetch = 0 : i64, scratch_operands = 0 : i64, tpu.core_type = #tpu.core_type<tc>, window_params = [{pipeline_mode = #tpu.pipeline_mode<synchronous>, transform_indices = @transform_0, window_bounds = array<i64: 8, 8>}, {pipeline_mode = #tpu.pipeline_mode<synchronous>, transform_indices = @transform_1, window_bounds = array<i64: 8, 1>}, {pipeline_mode = #tpu.pipeline_mode<synchronous>, transform_indices = @transform_2, window_bounds = array<i64: 8, 1>}, {transform_indices = @transform_3, window_bounds = array<i64: 8, 256>}, {transform_indices = @transform_4, window_bounds = array<i64: 8, 256>}]} {
    %c0 = arith.constant 0 : index
    %c0_0 = arith.constant 0 : index
    %0 = vector.load %arg4[%c0, %c0_0] : memref<8x256xf32, #tpu.memory_space<vmem>>, vector<8x256xf32>
    %c0_1 = arith.constant 0 : index
    %c0_2 = arith.constant 0 : index
    %1 = vector.load %arg1[%c0_1, %c0_2] : memref<8x8xf32, #tpu.memory_space<vmem>>, vector<8x8xf32>
    %cst = arith.constant dense<0.000000e+00> : vector<8x256xf32>
    %2 = tpu.matmul %1, %0, %cst {dimension_numbers = #tpu.dot_dimension_numbers<[1], [0], [0], [1], [0, 0, 1, 1], [], []>} : vector<8x8xf32>, vector<8x256xf32>, vector<8x256xf32> -> vector<8x256xf32>
    %c0_3 = arith.constant 0 : index
    %c0_4 = arith.constant 0 : index
    %3 = vector.load %arg2[%c0_3, %c0_4] : memref<8x1xf32, #tpu.memory_space<vmem>>, vector<8x1xf32>
    %4 = vector.broadcast %3 : vector<8x1xf32> to vector<8x256xf32>
    %5 = arith.mulf %4, %2 : vector<8x256xf32>
    %c0_5 = arith.constant 0 : index
    %c0_6 = arith.constant 0 : index
    %6 = vector.load %arg3[%c0_5, %c0_6] : memref<8x1xf32, #tpu.memory_space<vmem>>, vector<8x1xf32>
    %7 = vector.broadcast %6 : vector<8x1xf32> to vector<8x256xf32>
    %8 = arith.mulf %7, %0 : vector<8x256xf32>
    %9 = arith.addf %5, %8 : vector<8x256xf32>
    %c0_7 = arith.constant 0 : index
    %c0_8 = arith.constant 0 : index
    %10 = vector.load %arg5[%c0_7, %c0_8] : memref<8x256xf32, #tpu.memory_space<vmem>>, vector<8x256xf32>
    tpu.vector_store %arg5[%c0_7, %c0_8], %9 {strides = array<i32>} : memref<8x256xf32, #tpu.memory_space<vmem>>, vector<8x256xf32>,
    return
  }
  func.func @transform_0(%arg0: i32) -> (i32, i32) {
    %c0_i32 = arith.constant 0 : i32
    %c0_i32_0 = arith.constant 0 : i32
    %c0_i32_1 = arith.constant 0 : i32
    return %c0_i32, %c0_i32_0 : i32, i32
  }
  func.func @transform_1(%arg0: i32) -> (i32, i32) {
    %c0_i32 = arith.constant 0 : i32
    %c0_i32_0 = arith.constant 0 : i32
    %c0_i32_1 = arith.constant 0 : i32
    return %c0_i32, %c0_i32_0 : i32, i32
  }
  func.func @transform_2(%arg0: i32) -> (i32, i32) {
    %c0_i32 = arith.constant 0 : i32
    %c0_i32_0 = arith.constant 0 : i32
    %c0_i32_1 = arith.constant 0 : i32
    return %c0_i32, %c0_i32_0 : i32, i32
  }
  func.func @transform_3(%arg0: i32) -> (i32, i32) {
    %c0_i32 = arith.constant 0 : i32
    %c0_i32_0 = arith.constant 0 : i32
    return %c0_i32, %arg0 : i32, i32
  }
  func.func @transform_4(%arg0: i32) -> (i32, i32) {
    %c0_i32 = arith.constant 0 : i32
    %c0_i32_0 = arith.constant 0 : i32
    return %c0_i32, %arg0 : i32, i32
  }
}

</mosaic_0001>

<bundles_post_ra>
// kernel: tpu_custom_call.1
= control target key start
LH: loop header
LB: loop body
LE: loop exit
PB: predicated region body
PF: predicated region fallthrough
CT: control target
= control target key end

     0   :  { %vm21_vm0 = vcmask 64512   ;;  %v159_v3 = vmov 0.0   ;;  %s214_s0 = inlined_call_operand.vmem [shape: f32[8,8], index: 0, kind: input, shape index: {}]   ;;  %s215_s1 = inlined_call_operand.vmem [shape: f32[8,1], index: 1, kind: input, shape index: {}]   ;;  %s216_s2 = inlined_call_operand.vmem [shape: f32[8,1], index: 2, kind: input, shape index: {}]   ;;  %s217_s3 = inlined_call_operand.vmem [shape: f32[8,256], index: 3, kind: input, shape index: {}]   ;;  %s218_s4 = inlined_call_operand.hbm [shape: f32[8,256], index: 4, kind: output, shape index: {}]  }
   0x1   :  { %v19_v0 = vld [vmem:[%s217_s3 + $0x8] sm:$0xff]  ;;  %v18_v1 = vld [vmem:[%s217_s3] sm:$0xff]  ;;  %89 = vmatprep.mubr.f32.mxu0 %v159_v3 }
   0x2   :  { %v20_v2 = vld [vmem:[%s214_s0] sm:$0xff]  ;;  %25 = vmatprep.subr.mxu0 %v19_v0 }
   0x3   :  { %v96_v4 = vld [vmem:[%s215_s1] sm:$0xff] }
   0x4   :  { %9 = vsyncpa [#allocation3], 0  ;;  %26 = vmatpush1.msra.mxu0 %v18_v1  ;;  %v160_v5 = vmov 0   ;;  %v104_v6 = vld [vmem:[%s216_s2] sm:$0xff]  ;;  %s161_s0 = smov [#allocation2]  }
   0x5   :  { %134 = vset.pattern.permute.xlu0 %v160_v5  ;;  %130 = vmatmul.mubr.msk.f32.vlgmr.msra.gmra.mrb[0].mxu0 %vm21_vm0, %v20_v2  ;;  %s122_s24 = sshll.u32 %s161_s0, 4  ;;  %s123_s24 = int_to_ptr.vmem [resolvable:$true] %s122_s24 }
   0x6   :  { %99 = vperm.xlu0 %134, %v96_v4   ;;  %s135_s1 = scalar_lea.vmem %s123_s24, 256  ;;  %p140_p1 = scmp.lt.s32.totalorder %s123_s24, %s123_s24 }
   0x7   :  { %p136_p0 = scmp.ne.s32.totalorder %s123_s24, %s135_s1  ;;  %p141_p2 = scmp.lt.s32.totalorder %s135_s1, %s135_s1 }
   0x9   :  { %p142_p3 = por %p141_p2, %p140_p1 }
   0xa   :  { %107 = vperm.xlu0 %134, %v104_v6  }
   0xb   :  { %p143_p4 = pnand %p142_p3, %p136_p0 }
  0x85   :  { %v100_v7 = vpop.permute.xlu0 %99 }
  0x89   :  { %v108_v8 = vpop.permute.xlu0 %107 }
  0x8a   :  { %v110_v10 = vmul.f32 %v108_v8, %v18_v1  ;;  %v111_v13 = vmul.f32 %v108_v8, %v19_v0 }
  0xd8   :  { %v91_v9 = vpop.f32.mrb[0].mxu0 }
  0xd9   :  { %v102_v11 = vmul.f32 %v100_v7, %v91_v9  ;;  %v93_v12 = vpop.f32.mrb[1].mxu0 }
  0xda   :  { %v103_v14 = vmul.f32 %v100_v7, %v93_v12 }
  0xdb   :  { %v112_v15 = vadd.f32 %v110_v10, %v102_v11 }
  0xdc   :  { %v113_v16 = vadd.f32 %v111_v13, %v103_v14 }
  0xdd   :  { %114 = vst [vmem:[#allocation2] sm:$0xff] %v112_v15 }
  0xde   :  { %115 = vst [vmem:[#allocation2 + $0x8] sm:$0xff] %v113_v16 }
  0xdf   :  { %146 = shalt.err (!%p143_p4)
}
  0xe0   :  { %s147_s26 = scalar_lea.hbm %s218_s4, 256 }
  0xe1   :  { %p148_p5 = scmp.ne.s32.totalorder %s218_s4, %s147_s26  ;;  %p151_p6 = scmp.lt.u32.totalorder %s147_s26, %s218_s4 }
  0xe3   :  { %p153_p7 = pnand %p151_p6, %p148_p5 }
  0xe5   :  { %156 = shalt.err (!%p153_p7)
}
  0xe6   :  { %125 = dma.vmem_to_hbm [thread:$0]  %s123_s24, 256, %s218_s4, [#allocation3]  }
  0xe7   :  { %157 = dma.done.wait [#allocation3], 256  }
  0xe8   :  { %158 = vsyncadd [#allocation3], 4294967040 }
  0xe9   :  { %129 = vsyncpa [#allocation3], 1 }

</bundles_post_ra>
